<compile_context>
chip_gen: v7x
topology: tpu7x:2x2x1
jax: 0.10.0
libtpu: 0.0.40
codegen_flags: <defaults>
</compile_context>

<pallas_src>
import math
import functools

import jax
import jax.numpy as jnp
from jax.experimental import pallas as pl
from jax.experimental.pallas import tpu as pltpu


# Max rows of the flattened (unpacked) batch processed per grid step.
_TB_MAX = 8192


def _round_up(x, m):
    return ((x + m - 1) // m) * m


def _final_tanh_kernel(num_mid, *refs):
    """One packed batch tile of the full MLP.

    refs (num_mid > 0):
      z_ref     : (TBP, P*H)
      w_in_ref  : (P*H, P*HH)            b_in_ref  : (1, P*HH)        [f32]
      w_mid_ref : (num_mid, P*HH, P*HH)  b_mid_ref : (num_mid, 1, P*HH) [f32]
      w_out_ref : (P*HH, P*OD_pad)       b_out_ref : (1, P*OD_pad)    [f32]
      o_ref     : (TBP, P*OD_pad)
    When num_mid == 0 the w_mid/b_mid refs are omitted from the operand list.
    """
    if num_mid > 0:
        (z_ref, w_in_ref, b_in_ref, w_mid_ref, b_mid_ref,
         w_out_ref, b_out_ref, o_ref) = refs
    else:
        z_ref, w_in_ref, b_in_ref, w_out_ref, b_out_ref, o_ref = refs
        w_mid_ref = b_mid_ref = None

    mxu_dt = w_in_ref.dtype  # MXU operand dtype (bf16 by default, f32 optional)

    # linear_in + relu  (accumulate in f32, elementwise in f32)
    h = jnp.dot(z_ref[...].astype(mxu_dt), w_in_ref[...],
                preferred_element_type=jnp.float32)
    h = jnp.maximum(h + b_in_ref[...], 0.0)

    # num_mid is a small static Python int -> unrolled at trace time.
    for l in range(num_mid):
        h = jnp.dot(h.astype(mxu_dt), w_mid_ref[l],
                    preferred_element_type=jnp.float32)
        h = jnp.maximum(h + b_mid_ref[l], 0.0)

    # linear_out + tanh
    out = jnp.dot(h.astype(mxu_dt), w_out_ref[...],
                  preferred_element_type=jnp.float32)
    # TODO(synk): on v6e/v7x a bf16 tanh (EUP bf16) halves EUP cost if it ever
    # becomes the critical unit; kept f32 here so v5e never pays emulation.
    o_ref[...] = jnp.tanh(out + b_out_ref[...]).astype(o_ref.dtype)


def init_final_tanh_params(key, input_channels, hidden_channels,
                           hidden_hidden_channels, num_hidden_layers,
                           dtype=jnp.float32):
    """Init mirroring torch.nn.Linear default: U(-1/sqrt(fan_in), 1/sqrt(fan_in)).

    Weights stored transposed to (in, out) so the kernel computes x @ W.
    """
    num_mid = num_hidden_layers - 1
    keys = jax.random.split(key, 2 * (2 + max(num_mid, 1)))

    def lin(kw, kb, fan_in, fan_out):
        bound = 1.0 / math.sqrt(fan_in)
        w = jax.random.uniform(kw, (fan_in, fan_out), dtype, -bound, bound)
        b = jax.random.uniform(kb, (1, fan_out), dtype, -bound, bound)
        return w, b

    w_in, b_in = lin(keys[0], keys[1], hidden_channels, hidden_hidden_channels)

    if num_mid > 0:
        w_mids, b_mids = [], []
        for i in range(num_mid):
            w, b = lin(keys[2 + 2 * i], keys[3 + 2 * i],
                       hidden_hidden_channels, hidden_hidden_channels)
            w_mids.append(w)
            b_mids.append(b)
        w_mid = jnp.stack(w_mids, axis=0)          # (num_mid, HH, HH)
        b_mid = jnp.stack(b_mids, axis=0)          # (num_mid, 1, HH)
    else:
        w_mid = None
        b_mid = None

    w_out, b_out = lin(keys[-2], keys[-1], hidden_hidden_channels,
                       input_channels * hidden_channels)

    return dict(w_in=w_in, b_in=b_in, w_mid=w_mid, b_mid=b_mid,
                w_out=w_out, b_out=b_out)


def pack_final_tanh_params(params, input_channels, hidden_channels,
                           mxu_dtype=jnp.bfloat16):
    """One-time param prep: P-way block-diagonal weight replicas + tiled biases.

    P = 128 // max(H, HH) batch rows are packed per MXU contraction so the
    32-wide layers run at full 128-lane MXU occupancy.  Output columns are
    padded so the packed output last-dim is a multiple of 128 (lane-dense
    stores).  Weights are stored in `mxu_dtype` (bf16 default); biases in f32.
    """
    H = hidden_channels
    w_in = params["w_in"]                      # (H, HH)
    HH = w_in.shape[1]
    OD = input_channels * hidden_channels
    w_mid = params["w_mid"]                    # (num_mid, HH, HH) or None
    num_mid = 0 if w_mid is None else w_mid.shape[0]
    w_out = params["w_out"]                    # (HH, OD)

    m = max(H, HH)
    P = max(1, 128 // m) if m < 128 else 1
    od_align = 128 // math.gcd(P, 128)         # so P*OD_pad % 128 == 0
    OD_pad = _round_up(OD, od_align)

    def block_diag(w, reps):
        fi, fo = w.shape
        out = jnp.zeros((reps * fi, reps * fo), w.dtype)
        for p in range(reps):
            out = out.at[p * fi:(p + 1) * fi, p * fo:(p + 1) * fo].set(w)
        return out

    w_out_p = jnp.pad(w_out, ((0, 0), (0, OD_pad - OD)))
    b_out_p = jnp.pad(params["b_out"].reshape(1, OD),
                      ((0, 0), (0, OD_pad - OD)))

    packed = dict(
        w_in=block_diag(w_in, P).astype(mxu_dtype),              # (P*H, P*HH)
        b_in=jnp.tile(params["b_in"].reshape(1, HH),
                      (1, P)).astype(jnp.float32),               # (1, P*HH)
        w_out=block_diag(w_out_p, P).astype(mxu_dtype),          # (P*HH, P*OD_pad)
        b_out=jnp.tile(b_out_p, (1, P)).astype(jnp.float32),     # (1, P*OD_pad)
    )
    if num_mid > 0:
        packed["w_mid"] = jnp.stack(
            [block_diag(w_mid[l], P) for l in range(num_mid)]
        ).astype(mxu_dtype)                                      # (num_mid, P*HH, P*HH)
        packed["b_mid"] = jnp.tile(params["b_mid"].reshape(num_mid, 1, HH),
                                   (1, 1, P)).astype(jnp.float32)
    else:
        packed["w_mid"] = None
        packed["b_mid"] = None
    return packed


def final_tanh_forward(z, packed, input_channels, hidden_channels):
    """JAX wrapper: pack batch rows, grid over packed tiles, unpack output.

    `packed` comes from pack_final_tanh_params.  Output dtype follows z.dtype;
    matmul accumulation is always f32 inside the kernel.
    """
    H = hidden_channels
    batch_shape = z.shape[:-1]
    assert z.shape[-1] == H
    io_dtype = z.dtype

    # Derive packing metadata from the packed weight shapes.
    P = packed["w_in"].shape[0] // H
    HH = packed["w_in"].shape[1] // P
    OD = input_channels * hidden_channels
    OD_pad = packed["w_out"].shape[1] // P
    num_mid = 0 if packed.get("w_mid") is None else packed["w_mid"].shape[0]

    B = int(math.prod(batch_shape)) if batch_shape else 1
    z2d = z.reshape(B, H)

    itemsize = jnp.dtype(io_dtype).itemsize
    # Sublane packing of the I/O dtype: 8 for f32, 16 for bf16, 32 for 1-byte.
    row_align = {4: 8, 2: 16, 1: 32}.get(itemsize, 8)

    rows_total = -(-B // P)                       # packed rows before padding
    tbp_max = max(row_align, (_TB_MAX // P) // row_align * row_align)
    if rows_total >= 2 * tbp_max:
        TBP = tbp_max
    else:
        # Aim for >= 2 grid steps so "parallel" can shard across v7x's 2 TCs.
        TBP = max(row_align, _round_up(-(-rows_total // 2), row_align))
    rows_pad = _round_up(rows_total, TBP)
    n_steps = rows_pad // TBP

    B_pad = rows_pad * P
    if B_pad != B:
        z2d = jnp.pad(z2d, ((0, B_pad - B), (0, 0)))
    z_packed = z2d.reshape(rows_pad, P * H)

    # z / out tiled over packed batch rows; weights full-block & VMEM-resident.
    z_spec = pl.BlockSpec((TBP, P * H), lambda i: (i, 0))
    out_spec = pl.BlockSpec((TBP, P * OD_pad), lambda i: (i, 0))
    w_in_spec = pl.BlockSpec((P * H, P * HH), lambda i: (0, 0))
    b_in_spec = pl.BlockSpec((1, P * HH), lambda i: (0, 0))
    w_out_spec = pl.BlockSpec((P * HH, P * OD_pad), lambda i: (0, 0))
    b_out_spec = pl.BlockSpec((1, P * OD_pad), lambda i: (0, 0))

    operands = [z_packed, packed["w_in"], packed["b_in"]]
    in_specs = [z_spec, w_in_spec, b_in_spec]
    if num_mid > 0:
        operands += [packed["w_mid"], packed["b_mid"]]
        in_specs += [
            pl.BlockSpec((num_mid, P * HH, P * HH), lambda i: (0, 0, 0)),
            pl.BlockSpec((num_mid, 1, P * HH), lambda i: (0, 0, 0)),
        ]
    operands += [packed["w_out"], packed["b_out"]]
    in_specs += [w_out_spec, b_out_spec]

    weight_bytes = sum(int(a.size) * jnp.dtype(a.dtype).itemsize
                       for a in operands[1:])
    cost = pl.CostEstimate(
        flops=2 * rows_pad * ((P * H) * (P * HH)
                              + num_mid * (P * HH) * (P * HH)
                              + (P * HH) * (P * OD_pad)),
        transcendentals=rows_pad * P * OD_pad,
        bytes_accessed=rows_pad * P * (H + OD_pad) * itemsize + weight_bytes,
    )

    kernel = functools.partial(_final_tanh_kernel, num_mid)

    out_packed = pl.pallas_call(
        kernel,
        out_shape=jax.ShapeDtypeStruct((rows_pad, P * OD_pad), io_dtype),
        grid=(n_steps,),
        in_specs=in_specs,
        out_specs=out_spec,
        compiler_params=pltpu.CompilerParams(
            dimension_semantics=("parallel",),      # megacore split on v7x
            vmem_limit_bytes=48 * 1024 * 1024),
        cost_estimate=cost,
    )(*operands)

    # Unpack: contiguous reshape, then drop row/column padding.
    out2d = out_packed.reshape(rows_pad * P, OD_pad)[:B, :OD]

    # view(*z.shape[:-1], hidden_channels, input_channels)
    return out2d.reshape(*batch_shape, hidden_channels, input_channels)


def _reference_forward(z, params, input_channels, hidden_channels,
                       num_hidden_layers):
    """Pure-JAX reference (f32) for correctness checks."""
    f32 = lambda a: a.astype(jnp.float32)
    h = jnp.maximum(f32(z) @ f32(params["w_in"]) + f32(params["b_in"][0]), 0.0)
    for l in range(num_hidden_layers - 1):
        h = jnp.maximum(h @ f32(params["w_mid"][l]) + f32(params["b_mid"][l, 0]),
                        0.0)
    out = jnp.tanh(h @ f32(params["w_out"]) + f32(params["b_out"][0]))
    return out.reshape(*z.shape[:-1], hidden_channels, input_channels)


if __name__ == "__main__":
    input_channels = 4
    hidden_channels = 32
    hidden_hidden_channels = 32
    num_hidden_layers = 2          # -> 1 hidden "mid" linear layer

    key = jax.random.PRNGKey(0)
    k_param, k_z, k_param1 = jax.random.split(key, 3)

    params = init_final_tanh_params(k_param, input_channels, hidden_channels,
                                    hidden_hidden_channels, num_hidden_layers)

    # z: (batch=2, seq=8, hidden_channels=32)
    z = jax.random.normal(k_z, (2, 8, hidden_channels), dtype=jnp.float32)
    ref = _reference_forward(z, params, input_channels, hidden_channels,
                             num_hidden_layers)

    # --- f32-MXU packed path: tight check (validates block-diagonal packing) -
    packed_f32 = pack_final_tanh_params(params, input_channels, hidden_channels,
                                        mxu_dtype=jnp.float32)
    out_f32 = final_tanh_forward(z, packed_f32, input_channels, hidden_channels)
    out_f32 = jax.block_until_ready(out_f32)
    assert out_f32.shape == (2, 8, hidden_channels, input_channels), out_f32.shape
    assert jnp.allclose(out_f32, ref, atol=1e-5, rtol=1e-5), \
        "f32-MXU mismatch vs reference"

    # --- default path: bf16 MXU operands, f32 accumulation, f32 I/O ----------
    packed = pack_final_tanh_params(params, input_channels, hidden_channels)
    out = final_tanh_forward(z, packed, input_channels, hidden_channels)
    out = jax.block_until_ready(out)
    assert jnp.allclose(out, ref, atol=3e-2, rtol=3e-2), \
        "bf16-MXU mismatch vs reference"

    # --- bf16 I/O path: halved activation HBM traffic, loose check -----------
    out_bf16 = final_tanh_forward(z.astype(jnp.bfloat16), packed,
                                  input_channels, hidden_channels)
    out_bf16 = jax.block_until_ready(out_bf16)
    assert jnp.allclose(out_bf16.astype(jnp.float32), ref,
                        atol=5e-2, rtol=5e-2), "bf16 I/O mismatch vs reference"

    # --- num_hidden_layers == 1 path (no mid layers): operands skipped -------
    params1 = init_final_tanh_params(k_param1, input_channels, hidden_channels,
                                     hidden_hidden_channels, 1)
    packed1 = pack_final_tanh_params(params1, input_channels, hidden_channels,
                                     mxu_dtype=jnp.float32)
    out1 = final_tanh_forward(z, packed1, input_channels, hidden_channels)
    out1 = jax.block_until_ready(out1)
    ref1 = _reference_forward(z, params1, input_channels, hidden_channels, 1)
    assert jnp.allclose(out1, ref1, atol=1e-5, rtol=1e-5), "num_mid=0 mismatch"

    print("KERNEL_OK")
</pallas_src>

<mosaic_0001>
module attributes {stable_mosaic.version = 11 : i64} {
  func.func @_final_tanh_kernel(%arg0: i32, %arg1: memref<8x128xf32, #tpu.memory_space<vmem>>, %arg2: memref<128x128xf32, #tpu.memory_space<vmem>>, %arg3: memref<1x128xf32, #tpu.memory_space<vmem>>, %arg4: memref<1x128x128xf32, #tpu.memory_space<vmem>>, %arg5: memref<1x1x128xf32, #tpu.memory_space<vmem>>, %arg6: memref<128x512xf32, #tpu.memory_space<vmem>>, %arg7: memref<1x512xf32, #tpu.memory_space<vmem>>, %arg8: memref<8x512xf32, #tpu.memory_space<vmem>>) attributes {dimension_semantics = [#tpu.dimension_semantics<parallel>], iteration_bounds = array<i64: 1>, scalar_prefetch = 0 : i64, scratch_operands = 0 : i64, tpu.core_type = #tpu.core_type<tc>, window_params = [{transform_indices = @transform_0, window_bounds = array<i64: 8, 128>}, {pipeline_mode = #tpu.pipeline_mode<synchronous>, transform_indices = @transform_1, window_bounds = array<i64: 128, 128>}, {pipeline_mode = #tpu.pipeline_mode<synchronous>, transform_indices = @transform_2, window_bounds = array<i64: 1, 128>}, {pipeline_mode = #tpu.pipeline_mode<synchronous>, transform_indices = @transform_3, window_bounds = array<i64: 1, 128, 128>}, {pipeline_mode = #tpu.pipeline_mode<synchronous>, transform_indices = @transform_4, window_bounds = array<i64: 1, 1, 128>}, {pipeline_mode = #tpu.pipeline_mode<synchronous>, transform_indices = @transform_5, window_bounds = array<i64: 128, 512>}, {pipeline_mode = #tpu.pipeline_mode<synchronous>, transform_indices = @transform_6, window_bounds = array<i64: 1, 512>}, {transform_indices = @transform_7, window_bounds = array<i64: 8, 512>}]} {
    %c0 = arith.constant 0 : index
    %c0_0 = arith.constant 0 : index
    %0 = vector.load %arg1[%c0, %c0_0] : memref<8x128xf32, #tpu.memory_space<vmem>>, vector<8x128xf32>
    %c0_1 = arith.constant 0 : index
    %c0_2 = arith.constant 0 : index
    %1 = vector.load %arg2[%c0_1, %c0_2] : memref<128x128xf32, #tpu.memory_space<vmem>>, vector<128x128xf32>
    %cst = arith.constant dense<0.000000e+00> : vector<8x128xf32>
    %2 = tpu.matmul %0, %1, %cst {dimension_numbers = #tpu.dot_dimension_numbers<[1], [0], [0], [1], [0, 0, 1, 1], [], []>} : vector<8x128xf32>, vector<128x128xf32>, vector<8x128xf32> -> vector<8x128xf32>
    %c0_3 = arith.constant 0 : index
    %c0_4 = arith.constant 0 : index
    %3 = vector.load %arg3[%c0_3, %c0_4] : memref<1x128xf32, #tpu.memory_space<vmem>>, vector<1x128xf32>
    %4 = vector.broadcast %3 : vector<1x128xf32> to vector<8x128xf32>
    %5 = arith.addf %2, %4 : vector<8x128xf32>
    %cst_5 = arith.constant 0.000000e+00 : f32
    %6 = vector.broadcast %cst_5 : f32 to vector<8x128xf32>
    %7 = arith.maximumf %5, %6 : vector<8x128xf32>
    %c0_6 = arith.constant 0 : index
    %c0_7 = arith.constant 0 : index
    %c0_8 = arith.constant 0 : index
    %8 = vector.load %arg4[%c0_6, %c0_7, %c0_8] : memref<1x128x128xf32, #tpu.memory_space<vmem>>, vector<1x128x128xf32>
    %9 = vector.shape_cast %8 : vector<1x128x128xf32> to vector<128x128xf32>
    %cst_9 = arith.constant dense<0.000000e+00> : vector<8x128xf32>
    %10 = tpu.matmul %7, %9, %cst_9 {dimension_numbers = #tpu.dot_dimension_numbers<[1], [0], [0], [1], [0, 0, 1, 1], [], []>} : vector<8x128xf32>, vector<128x128xf32>, vector<8x128xf32> -> vector<8x128xf32>
    %c0_10 = arith.constant 0 : index
    %c0_11 = arith.constant 0 : index
    %c0_12 = arith.constant 0 : index
    %11 = vector.load %arg5[%c0_10, %c0_11, %c0_12] : memref<1x1x128xf32, #tpu.memory_space<vmem>>, vector<1x1x128xf32>
    %12 = vector.shape_cast %11 : vector<1x1x128xf32> to vector<1x128xf32>
    %13 = vector.broadcast %12 : vector<1x128xf32> to vector<8x128xf32>
    %14 = arith.addf %10, %13 : vector<8x128xf32>
    %cst_13 = arith.constant 0.000000e+00 : f32
    %15 = vector.broadcast %cst_13 : f32 to vector<8x128xf32>
    %16 = arith.maximumf %14, %15 : vector<8x128xf32>
    %c0_14 = arith.constant 0 : index
    %c0_15 = arith.constant 0 : index
    %17 = vector.load %arg6[%c0_14, %c0_15] : memref<128x512xf32, #tpu.memory_space<vmem>>, vector<128x512xf32>
    %cst_16 = arith.constant dense<0.000000e+00> : vector<8x512xf32>
    %18 = tpu.matmul %16, %17, %cst_16 {dimension_numbers = #tpu.dot_dimension_numbers<[1], [0], [0], [1], [0, 0, 1, 1], [], []>} : vector<8x128xf32>, vector<128x512xf32>, vector<8x512xf32> -> vector<8x512xf32>
    %c0_17 = arith.constant 0 : index
    %c0_18 = arith.constant 0 : index
    %19 = vector.load %arg7[%c0_17, %c0_18] : memref<1x512xf32, #tpu.memory_space<vmem>>, vector<1x512xf32>
    %20 = vector.broadcast %19 : vector<1x512xf32> to vector<8x512xf32>
    %21 = arith.addf %18, %20 : vector<8x512xf32>
    %22 = math.tanh %21 : vector<8x512xf32>
    %c0_19 = arith.constant 0 : index
    %c0_20 = arith.constant 0 : index
    %23 = vector.load %arg8[%c0_19, %c0_20] : memref<8x512xf32, #tpu.memory_space<vmem>>, vector<8x512xf32>
    tpu.vector_store %arg8[%c0_19, %c0_20], %22 {strides = array<i32>} : memref<8x512xf32, #tpu.memory_space<vmem>>, vector<8x512xf32>,
    return
  }
  func.func @transform_0(%arg0: i32) -> (i32, i32) {
    %c0_i32 = arith.constant 0 : i32
    %c0_i32_0 = arith.constant 0 : i32
    return %arg0, %c0_i32 : i32, i32
  }
  func.func @transform_1(%arg0: i32) -> (i32, i32) {
    %c0_i32 = arith.constant 0 : i32
    %c0_i32_0 = arith.constant 0 : i32
    %c0_i32_1 = arith.constant 0 : i32
    return %c0_i32, %c0_i32_0 : i32, i32
  }
  func.func @transform_2(%arg0: i32) -> (i32, i32) {
    %c0_i32 = arith.constant 0 : i32
    %c0_i32_0 = arith.constant 0 : i32
    %c0_i32_1 = arith.constant 0 : i32
    return %c0_i32, %c0_i32_0 : i32, i32
  }
  func.func @transform_3(%arg0: i32) -> (i32, i32, i32) {
    %c0_i32 = arith.constant 0 : i32
    %c0_i32_0 = arith.constant 0 : i32
    %c0_i32_1 = arith.constant 0 : i32
    %c0_i32_2 = arith.constant 0 : i32
    return %c0_i32, %c0_i32_0, %c0_i32_1 : i32, i32, i32
  }
  func.func @transform_4(%arg0: i32) -> (i32, i32, i32) {
    %c0_i32 = arith.constant 0 : i32
    %c0_i32_0 = arith.constant 0 : i32
    %c0_i32_1 = arith.constant 0 : i32
    %c0_i32_2 = arith.constant 0 : i32
    return %c0_i32, %c0_i32_0, %c0_i32_1 : i32, i32, i32
  }
  func.func @transform_5(%arg0: i32) -> (i32, i32) {
    %c0_i32 = arith.constant 0 : i32
    %c0_i32_0 = arith.constant 0 : i32
    %c0_i32_1 = arith.constant 0 : i32
    return %c0_i32, %c0_i32_0 : i32, i32
  }
  func.func @transform_6(%arg0: i32) -> (i32, i32) {
    %c0_i32 = arith.constant 0 : i32
    %c0_i32_0 = arith.constant 0 : i32
    %c0_i32_1 = arith.constant 0 : i32
    return %c0_i32, %c0_i32_0 : i32, i32
  }
  func.func @transform_7(%arg0: i32) -> (i32, i32) {
    %c0_i32 = arith.constant 0 : i32
    %c0_i32_0 = arith.constant 0 : i32
    return %arg0, %c0_i32 : i32, i32
  }
}

</mosaic_0001>

<bundles_post_ra>
// kernel: tpu_custom_call.1
= control target key start
LH: loop header
LB: loop body
LE: loop exit
PB: predicated region body
PF: predicated region fallthrough
CT: control target
= control target key end

     0   :  { %12 = vsyncpa [#allocation3], 0  ;;  %s1025_s0 = inlined_call_operand.hbm [shape: f32[8,128], index: 0, kind: input, shape index: {}]   ;;  %s1026_s1 = inlined_call_operand.hbm [shape: f32[128,128], index: 1, kind: input, shape index: {}]   ;;  %s1027_s2 = inlined_call_operand.vmem [shape: f32[1,128], index: 2, kind: input, shape index: {}]   ;;  %s1028_s3 = inlined_call_operand.hbm [shape: f32[1,128,128], index: 3, kind: input, shape index: {}]   ;;  %s1029_s4 = inlined_call_operand.vmem [shape: f32[1,1,128], index: 4, kind: input, shape index: {}]   ;;  %s1030_s5 = inlined_call_operand.hbm [shape: f32[128,512], index: 5, kind: input, shape index: {}]   ;;  %s1031_s6 = inlined_call_operand.vmem [shape: f32[1,512], index: 6, kind: input, shape index: {}]   ;;  %s1032_s7 = inlined_call_operand.hbm [shape: f32[8,512], index: 7, kind: output, shape index: {}]  }
   0x1   :  { %13 = vsyncpa [#allocation6], 0 }
   0x2   :  { %14 = vsyncpa [#allocation9], 0 }
   0x3   :  { %15 = vsyncpa [#allocation4], 0  ;;  %s878_s24 = smov [#allocation5]   ;;  %s760_s28 = scalar_lea.hbm %s1026_s1, 2048 }
   0x4   :  { %s31_s25 = sshll.u32 %s878_s24, 4  ;;  %p761_p0 = scmp.ne.s32.totalorder %s1026_s1, %s760_s28  ;;  %s32_s25 = int_to_ptr.vmem [resolvable:$true] %s31_s25 }
   0x5   :  { %p764_p1 = scmp.lt.u32.totalorder %s760_s28, %s1026_s1 }
   0x7   :  { %p766_p2 = pnand %p764_p1, %p761_p0 }
   0x9   :  { %769 = shalt.err (!%p766_p2)
}
   0xa   :  { %s770_s10 = scalar_lea.vmem %s32_s25, 2048  ;;  %p775_p4 = scmp.lt.s32.totalorder %s32_s25, %s32_s25 }
   0xb   :  { %p771_p3 = scmp.ne.s32.totalorder %s32_s25, %s770_s10  ;;  %p776_p5 = scmp.lt.s32.totalorder %s770_s10, %s770_s10 }
   0xd   :  { %p777_p6 = por %p776_p5, %p775_p4 }
   0xf   :  { %p778_p7 = pnand %p777_p6, %p771_p3 }
  0x11   :  { %781 = shalt.err (!%p778_p7)
}
  0x12   :  { %s879_s11 = smov 128   ;;  %s880_s12 = smov 8  }
  0x13   :  { %37 = dma.hbm_to_vmem [thread:$0]  %s1026_s1, 2048, %s32_s25, [#allocation6], %s879_s11, %s879_s11, %s880_s12  }
  0x14   :  { %s881_s15 = smov [#allocation2]   ;;  %s882_s17 = smov [#allocation7]  }
  0x15   :  { %s22_s16 = sshll.u32 %s881_s15, 4  ;;  %s45_s18 = sshll.u32 %s882_s17, 4  ;;  %s23_s16 = int_to_ptr.vmem [resolvable:$true] %s22_s16  ;;  %s46_s18 = int_to_ptr.vmem [resolvable:$true] %s45_s18 }
  0x16   :  { %s782_s21 = scalar_lea.hbm %s1025_s0, 128 }
  0x17   :  { %p783_p8 = scmp.ne.s32.totalorder %s1025_s0, %s782_s21  ;;  %p786_p9 = scmp.lt.u32.totalorder %s782_s21, %s1025_s0 }
  0x19   :  { %p788_p10 = pnand %p786_p9, %p783_p8 }
  0x1b   :  { %791 = shalt.err (!%p788_p10)
}
  0x1c   :  { %s792_s1 = scalar_lea.vmem %s23_s16, 128  ;;  %p797_p12 = scmp.lt.s32.totalorder %s23_s16, %s23_s16 }
  0x1d   :  { %p793_p11 = scmp.ne.s32.totalorder %s23_s16, %s792_s1  ;;  %p798_p13 = scmp.lt.s32.totalorder %s792_s1, %s792_s1 }
  0x1f   :  { %p799_p0 = por %p798_p13, %p797_p12 }
  0x21   :  { %p800_p1 = pnand %p799_p0, %p793_p11 }
  0x23   :  { %803 = shalt.err (!%p800_p1)
}
  0x24   :  { %25 = dma.hbm_to_vmem [thread:$0]  %s1025_s0, 128, %s23_s16, [#allocation3]  }
  0x25   :  { %s804_s30 = scalar_lea.hbm %s1028_s3, 2048 }
  0x26   :  { %p805_p2 = scmp.ne.s32.totalorder %s1028_s3, %s804_s30  ;;  %p808_p3 = scmp.lt.u32.totalorder %s804_s30, %s1028_s3 }
  0x28   :  { %p810_p4 = pnand %p808_p3, %p805_p2 }
  0x2a   :  { %813 = shalt.err (!%p810_p4)
}
  0x2b   :  { %s814_s14 = scalar_lea.vmem %s46_s18, 2048  ;;  %p819_p6 = scmp.lt.s32.totalorder %s46_s18, %s46_s18 }
  0x2c   :  { %p815_p5 = scmp.ne.s32.totalorder %s46_s18, %s814_s14  ;;  %p820_p7 = scmp.lt.s32.totalorder %s814_s14, %s814_s14 }
  0x2e   :  { %p821_p8 = por %p820_p7, %p819_p6 }
  0x30   :  { %p822_p9 = pnand %p821_p8, %p815_p5 }
  0x32   :  { %825 = shalt.err (!%p822_p9)
}
  0x33   :  { %51 = dma.hbm_to_vmem [thread:$0]  %s1028_s3, 2048, %s46_s18, [#allocation6], %s879_s11, %s879_s11, %s880_s12  }
  0x34   :  { %s883_s16 = smov [#allocation8]   ;;  %s826_s21 = scalar_lea.hbm %s1030_s5, 8192 }
  0x35   :  { %s59_s17 = sshll.u32 %s883_s16, 4  ;;  %p827_p10 = scmp.ne.s32.totalorder %s1030_s5, %s826_s21  ;;  %s60_s17 = int_to_ptr.vmem [resolvable:$true] %s59_s17 }
  0x36   :  { %p830_p11 = scmp.lt.u32.totalorder %s826_s21, %s1030_s5 }
  0x38   :  { %p832_p12 = pnand %p830_p11, %p827_p10 }
  0x3a   :  { %835 = shalt.err (!%p832_p12)
}
  0x3b   :  { %s836_s1 = scalar_lea.vmem %s60_s17, 8192  ;;  %p841_p0 = scmp.lt.s32.totalorder %s60_s17, %s60_s17 }
  0x3c   :  { %p837_p13 = scmp.ne.s32.totalorder %s60_s17, %s836_s1  ;;  %p842_p1 = scmp.lt.s32.totalorder %s836_s1, %s836_s1 }
  0x3e   :  { %p843_p2 = por %p842_p1, %p841_p0 }
  0x40   :  { %p844_p3 = pnand %p843_p2, %p837_p13 }
  0x42   :  { %847 = shalt.err (!%p844_p3)
}
  0x43   :  { %s884_s3 = smov 512   ;;  %s885_s11 = smov 32  }
  0x44   :  { %65 = dma.hbm_to_vmem [thread:$0]  %s1030_s5, 8192, %s60_s17, [#allocation9], %s884_s3, %s884_s3, %s885_s11  }
  0x45   :  { %870 = dma.done.wait [#allocation3], 128  }
  0x46   :  { %871 = vsyncadd [#allocation3], 4294967168 }
  0x47   :  { %872 = dma.done.wait [#allocation6], 4096  }
  0x48   :  { %873 = vsyncadd [#allocation6], 4294963200 }
  0x49   :  { %874 = dma.done.wait [#allocation9], 8192  }
  0x4a   :  { %875 = vsyncadd [#allocation9], 4294959104  ;;  %v886_v0 = vmov 0.0|0.0   ;;  %vm887_vm0 = vmmov 0   ;;  %v888_v1 = vmov 0.0   ;;  %v81_v2 = vld [vmem:[#allocation5] sm:$0xff] }
  0x4b   :  { %628 = vmatprep.subr.bf16.mxu0 %v886_v0  ;;  %590 = vmatprep.mubr.msk.f32.mxu0 %vm887_vm0, %v888_v1  ;;  %v82_v3 = vld [vmem:[#allocation5 + $0x8] sm:$0xff]  ;;  %v83_v4 = vld [vmem:[#allocation5 + $0x10] sm:$0xff]  ;;  %v84_v6 = vld [vmem:[#allocation5 + $0x18] sm:$0xff] }
  0x4c   :  { %652 = vmatprep.subr.bf16.mxu1 %v886_v0  ;;  %625 = vmatprep.mubr.msk.f32.mxu1 %vm887_vm0, %v888_v1  ;;  %v629_v5 = vpack.c.bf16 %v82_v3, %v81_v2  ;;  %v632_v7 = vpack.c.bf16 %v84_v6, %v83_v4  ;;  %v85_v8 = vld [vmem:[#allocation5 + $0x20] sm:$0xff]  ;;  %v86_v9 = vld [vmem:[#allocation5 + $0x28] sm:$0xff]  ;;  %v177_v12 = vld [vmem:[#allocation7 + $0x10] sm:$0xff] }
  0x4d   :  { %v175_v10 = vld [vmem:[#allocation7] sm:$0xff]  ;;  %v176_v11 = vld [vmem:[#allocation7 + $0x8] sm:$0xff]  ;;  %v178_v13 = vld [vmem:[#allocation7 + $0x18] sm:$0xff]  ;;  %v635_v14 = vpack.c.bf16 %v86_v9, %v85_v8 }
  0x4e   :  { %630 = vmatpush3.bf16.msra.mxu0 %v629_v5  ;;  %v653_v15 = vpack.c.bf16 %v176_v11, %v175_v10  ;;  %v87_v16 = vld [vmem:[#allocation5 + $0x30] sm:$0xff]  ;;  %v88_v17 = vld [vmem:[#allocation5 + $0x38] sm:$0xff]  ;;  %v656_v18 = vpack.c.bf16 %v178_v13, %v177_v12  ;;  %v179_v19 = vld [vmem:[#allocation7 + $0x20] sm:$0xff] }
  0x4f   :  { %631 = vmatprep.subr.bf16.mxu0 %v886_v0  ;;  %v180_v20 = vld [vmem:[#allocation7 + $0x28] sm:$0xff]  ;;  %v638_v21 = vpack.c.bf16 %v88_v17, %v87_v16  ;;  %v89_v22 = vld [vmem:[#allocation5 + $0x40] sm:$0xff]  ;;  %v181_v25 = vld [vmem:[#allocation7 + $0x30] sm:$0xff] }
  0x50   :  { %654 = vmatpush3.bf16.msra.mxu1 %v653_v15  ;;  %v90_v23 = vld [vmem:[#allocation5 + $0x48] sm:$0xff]  ;;  %v659_v24 = vpack.c.bf16 %v180_v20, %v179_v19  ;;  %v182_v26 = vld [vmem:[#allocation7 + $0x38] sm:$0xff]  ;;  %v91_v28 = vld [vmem:[#allocation5 + $0x50] sm:$0xff] }
  0x51   :  { %655 = vmatprep.subr.bf16.mxu1 %v886_v0  ;;  %v641_v27 = vpack.c.bf16 %v90_v23, %v89_v22  ;;  %v92_v29 = vld [vmem:[#allocation5 + $0x58] sm:$0xff]  ;;  %v662_v30 = vpack.c.bf16 %v182_v26, %v181_v25  ;;  %v183_v31 = vld [vmem:[#allocation7 + $0x40] sm:$0xff]  ;;  %v184_v32 = vld [vmem:[#allocation7 + $0x48] sm:$0xff] }
  0x52   :  { %633 = vmatpush3.bf16.msra.mxu0 %v632_v7  ;;  %v644_v33 = vpack.c.bf16 %v92_v29, %v91_v28  ;;  %v93_v34 = vld [vmem:[#allocation5 + $0x60] sm:$0xff]  ;;  %v94_v35 = vld [vmem:[#allocation5 + $0x68] sm:$0xff]  ;;  %v665_v36 = vpack.c.bf16 %v184_v32, %v183_v31  ;;  %v185_v37 = vld [vmem:[#allocation7 + $0x50] sm:$0xff] }
  0x53   :  { %634 = vmatprep.subr.bf16.mxu0 %v886_v0  ;;  %v186_v38 = vld [vmem:[#allocation7 + $0x58] sm:$0xff]  ;;  %v647_v39 = vpack.c.bf16 %v94_v35, %v93_v34  ;;  %v95_v40 = vld [vmem:[#allocation5 + $0x70] sm:$0xff]  ;;  %v187_v43 = vld [vmem:[#allocation7 + $0x60] sm:$0xff] }
  0x54   :  { %657 = vmatpush3.bf16.msra.mxu1 %v656_v18  ;;  %v96_v41 = vld [vmem:[#allocation5 + $0x78] sm:$0xff]  ;;  %v668_v42 = vpack.c.bf16 %v186_v38, %v185_v37  ;;  %v188_v44 = vld [vmem:[#allocation7 + $0x68] sm:$0xff]  ;;  %v189_v48 = vld [vmem:[#allocation7 + $0x70] sm:$0xff] }
  0x55   :  { %658 = vmatprep.subr.bf16.mxu1 %v886_v0  ;;  %v650_v45 = vpack.c.bf16 %v96_v41, %v95_v40  ;;  %v671_v46 = vpack.c.bf16 %v188_v44, %v187_v43  ;;  %v80_v47 = vld [vmem:[#allocation2] sm:$0xff]  ;;  %v270_v51 = vld [vmem:[#allocation8 + $0x8] sm:$0xff]  ;;  %v269_v56 = vld [vmem:[#allocation8] sm:$0xff] }
  0x56   :  { %636 = vmatpush3.bf16.msra.mxu0 %v635_v14  ;;  %v190_v49 = vld [vmem:[#allocation7 + $0x78] sm:$0xff]  ;;  %v274_v52 = vld [vmem:[#allocation8 + $0x28] sm:$0xff]  ;;  %v273_v57 = vld [vmem:[#allocation8 + $0x20] sm:$0xff] }
  0x57   :  { %637 = vmatprep.subr.bf16.mxu0 %v886_v0  ;;  %v674_v50 = vpack.c.bf16 %v190_v49, %v189_v48  ;;  %v272_v53 = vld [vmem:[#allocation8 + $0x18] sm:$0xff]  ;;  %v676_v54 = vpack.c.bf16 %v274_v52, %v270_v51  ;;  %v678_v59 = vpack.c.bf16 %v273_v57, %v269_v56  ;;  %v278_v60 = vld [vmem:[#allocation8 + $0x48] sm:$0xff]  ;;  %v277_v63 = vld [vmem:[#allocation8 + $0x40] sm:$0xff] }
  0x58   :  { %660 = vmatpush3.bf16.msra.mxu1 %v659_v24  ;;  %v276_v55 = vld [vmem:[#allocation8 + $0x38] sm:$0xff]  ;;  %v282_v61 = vld [vmem:[#allocation8 + $0x68] sm:$0xff]  ;;  %v285_v6 = vld [vmem:[#allocation8 + $0x80] sm:$0xff] }
  0x59   :  { %661 = vmatprep.subr.bf16.mxu1 %v886_v0  ;;  %v708_v58 = vpack.c.bf16 %v276_v55, %v272_v53  ;;  %v680_v62 = vpack.c.bf16 %v282_v61, %v278_v60  ;;  %v286_v3 = vld [vmem:[#allocation8 + $0x88] sm:$0xff]  ;;  %v289_v7 = vld [vmem:[#allocation8 + $0xa0] sm:$0xff]  ;;  %v271_v34 = vld [vmem:[#allocation8 + $0x10] sm:$0xff] }
  0x5a   :  { %639 = vmatpush3.bf16.msra.mxu0 %v638_v21  ;;  %v290_v4 = vld [vmem:[#allocation8 + $0xa8] sm:$0xff]  ;;  %v686_v8 = vpack.c.bf16 %v289_v7, %v285_v6  ;;  %v293_v12 = vld [vmem:[#allocation8 + $0xc0] sm:$0xff]  ;;  %v275_v35 = vld [vmem:[#allocation8 + $0x30] sm:$0xff] }
  0x5b   :  { %640 = vmatprep.subr.bf16.mxu0 %v886_v0  ;;  %v684_v5 = vpack.c.bf16 %v290_v4, %v286_v3  ;;  %v294_v9 = vld [vmem:[#allocation8 + $0xc8] sm:$0xff]  ;;  %v297_v13 = vld [vmem:[#allocation8 + $0xe0] sm:$0xff]  ;;  %v280_v37 = vld [vmem:[#allocation8 + $0x58] sm:$0xff]  ;;  %v710_v41 = vpack.c.bf16 %v275_v35, %v271_v34 }
  0x5c   :  { %663 = vmatpush3.bf16.msra.mxu1 %v662_v30  ;;  %v298_v10 = vld [vmem:[#allocation8 + $0xe8] sm:$0xff]  ;;  %v690_v14 = vpack.c.bf16 %v297_v13, %v293_v12  ;;  %v301_v18 = vld [vmem:[#allocation8 + $0x100] sm:$0xff]  ;;  %v284_v38 = vld [vmem:[#allocation8 + $0x78] sm:$0xff] }
  0x5d   :  { %664 = vmatprep.subr.bf16.mxu1 %v886_v0  ;;  %v688_v11 = vpack.c.bf16 %v298_v10, %v294_v9  ;;  %v302_v15 = vld [vmem:[#allocation8 + $0x108] sm:$0xff]  ;;  %v305_v19 = vld [vmem:[#allocation8 + $0x120] sm:$0xff]  ;;  %v712_v43 = vpack.c.bf16 %v284_v38, %v280_v37  ;;  %v279_v44 = vld [vmem:[#allocation8 + $0x50] sm:$0xff] }
  0x5e   :  { %642 = vmatpush3.bf16.msra.mxu0 %v641_v27  ;;  %v306_v16 = vld [vmem:[#allocation8 + $0x128] sm:$0xff]  ;;  %v694_v20 = vpack.c.bf16 %v305_v19, %v301_v18  ;;  %v309_v24 = vld [vmem:[#allocation8 + $0x140] sm:$0xff]  ;;  %v291_v51 = vld [vmem:[#allocation8 + $0xb0] sm:$0xff] }
  0x5f   :  { %643 = vmatprep.subr.bf16.mxu0 %v886_v0  ;;  %v692_v17 = vpack.c.bf16 %v306_v16, %v302_v15  ;;  %v310_v21 = vld [vmem:[#allocation8 + $0x148] sm:$0xff]  ;;  %v313_v25 = vld [vmem:[#allocation8 + $0x160] sm:$0xff]  ;;  %v296_v52 = vld [vmem:[#allocation8 + $0xd8] sm:$0xff] }
  0x60   :  { %666 = vmatpush3.bf16.msra.mxu1 %v665_v36  ;;  %v314_v22 = vld [vmem:[#allocation8 + $0x168] sm:$0xff]  ;;  %v698_v26 = vpack.c.bf16 %v313_v25, %v309_v24  ;;  %v317_v30 = vld [vmem:[#allocation8 + $0x180] sm:$0xff]  ;;  %v300_v53 = vld [vmem:[#allocation8 + $0xf8] sm:$0xff] }
  0x61   :  { %667 = vmatprep.subr.bf16.mxu1 %v886_v0  ;;  %v696_v23 = vpack.c.bf16 %v314_v22, %v310_v21  ;;  %v318_v27 = vld [vmem:[#allocation8 + $0x188] sm:$0xff]  ;;  %v321_v31 = vld [vmem:[#allocation8 + $0x1a0] sm:$0xff]  ;;  %v720_v55 = vpack.c.bf16 %v300_v53, %v296_v52  ;;  %v295_v56 = vld [vmem:[#allocation8 + $0xd0] sm:$0xff] }
  0x62   :  { %645 = vmatpush3.bf16.msra.mxu0 %v644_v33  ;;  %v322_v28 = vld [vmem:[#allocation8 + $0x1a8] sm:$0xff]  ;;  %v702_v32 = vpack.c.bf16 %v321_v31, %v317_v30  ;;  %v522_v33 = vld [vmem:[%s1027_s2] ss:$0 sm:$0xff]  ;;  %v299_v57 = vld [vmem:[#allocation8 + $0xf0] sm:$0xff]  ;;  %v335_v30 = vlaneseq }
  0x63   :  { %646 = vmatprep.subr.bf16.mxu0 %v886_v0  ;;  %v700_v29 = vpack.c.bf16 %v322_v28, %v318_v27  ;;  %v722_v60 = vpack.c.bf16 %v299_v57, %v295_v56  ;;  %v311_v4 = vld [vmem:[#allocation8 + $0x150] sm:$0xff]  ;;  %v320_v6 = vld [vmem:[#allocation8 + $0x198] sm:$0xff]  ;;  %v326_v13 = vld [vmem:[#allocation8 + $0x1c8] sm:$0xff] }
  0x64   :  { %669 = vmatpush3.bf16.msra.mxu1 %v668_v42  ;;  %v324_v7 = vld [vmem:[#allocation8 + $0x1b8] sm:$0xff]  ;;  %v319_v10 = vld [vmem:[#allocation8 + $0x190] sm:$0xff]  ;;  %v325_v18 = vld [vmem:[#allocation8 + $0x1c0] sm:$0xff]  ;;  %v336_v31 = vshrl.u32 %v335_v30, 7 }
  0x65   :  { %670 = vmatprep.subr.bf16.mxu1 %v886_v0  ;;  %v732_v9 = vpack.c.bf16 %v324_v7, %v320_v6  ;;  %v328_v15 = vld [vmem:[#allocation8 + $0x1d8] sm:$0xff]  ;;  %v329_v19 = vld [vmem:[#allocation8 + $0x1e0] sm:$0xff]  ;;  %v327_v22 = vld [vmem:[#allocation8 + $0x1d0] sm:$0xff] }
  0x66   :  { %648 = vmatpush3.bf16.msra.mxu0 %v647_v39  ;;  %v706_v21 = vpack.c.bf16 %v329_v19, %v325_v18  ;;  %v523_v25 = vld [vmem:[%s1029_s4] ss:$0 sm:$0xff]  ;;  %v341_v35 = vsub.s32 1, %v336_v31  ;;  %s889_s4 = smov [#allocation10]  }
  0x67   :  { %649 = vmatprep.subr.bf16.mxu0 %v886_v0  ;;  %v333_v34 = vld [vmem:[%s1031_s6] sm:$0xf]  ;;  %s511_s6 = sshll.u32 %s889_s4, 4  ;;  %s512_s6 = int_to_ptr.vmem [resolvable:$true] %s511_s6 }
  0x68   :  { %672 = vmatpush3.bf16.msra.mxu1 %v671_v46  ;;  %v288_v46 = vld [vmem:[#allocation8 + $0x98] sm:$0xff]  ;;  %s848_s30 = scalar_lea.vmem %s512_s6, 512  ;;  %p853_p5 = scmp.lt.s32.totalorder %s512_s6, %s512_s6 }
  0x69   :  { %673 = vmatprep.subr.bf16.mxu1 %v886_v0  ;;  %v281_v0 = vld [vmem:[#allocation8 + $0x60] sm:$0xff]  ;;  %p849_p4 = scmp.ne.s32.totalorder %s512_s6, %s848_s30  ;;  %p854_p6 = scmp.lt.s32.totalorder %s848_s30, %s848_s30 }
  0x6a   :  { %651 = vmatpush3.bf16.msra.mxu0 %v650_v45  ;;  %v682_v2 = vpack.c.bf16 %v281_v0, %v277_v63  ;;  %v283_v45 = vld [vmem:[#allocation8 + $0x70] sm:$0xff]  ;;  %v312_v63 = vld [vmem:[#allocation8 + $0x158] sm:$0xff] }
  0x6b   :  { %677 = vmatprep.subr.bf16.mxu0 %v676_v54  ;;  %v714_v48 = vpack.c.bf16 %v283_v45, %v279_v44  ;;  %v316_v0 = vld [vmem:[#allocation8 + $0x178] sm:$0xff]  ;;  %p855_p7 = por %p854_p6, %p853_p5 }
  0x6c   :  { %675 = vmatpush3.bf16.msra.mxu1 %v674_v50  ;;  %v287_v50 = vld [vmem:[#allocation8 + $0x90] sm:$0xff]  ;;  %v728_v3 = vpack.c.bf16 %v316_v0, %v312_v63 }
  0x6d   :  { %591 = vmatmul.mubr.f32.vlgmr.msra.gmra.mrb[0].mxu0 %v80_v47  ;;  %709 = vmatprep.subr.bf16.mxu1 %v708_v58  ;;  %v292_v47 = vld [vmem:[#allocation8 + $0xb8] sm:$0xff]  ;;  %v718_v54 = vpack.c.bf16 %v291_v51, %v287_v50  ;;  %p856_p8 = pnand %p855_p7, %p849_p4 }
  0x6e   :  { %419 = vmatprep.mubr.f32.mxu0 %v888_v1  ;;  %679 = vmatpush1.bf16.msra.mxu0 %v678_v59  ;;  %v716_v49 = vpack.c.bf16 %v292_v47, %v288_v46  ;;  %v304_v58 = vld [vmem:[#allocation8 + $0x118] sm:$0xff] }
  0x6f   :  { %681 = vmatprep.subr.bf16.mxu0 %v680_v62  ;;  %v308_v59 = vld [vmem:[#allocation8 + $0x138] sm:$0xff]  ;;  %v303_v62 = vld [vmem:[#allocation8 + $0x110] sm:$0xff] }
  0x70   :  { %v724_v61 = vpack.c.bf16 %v308_v59, %v304_v58 }
  0x72   :  { %683 = vmatpush1.bf16.msra.mxu0 %v682_v2 }
  0x73   :  { %685 = vmatprep.subr.bf16.mxu0 %v684_v5  ;;  %v315_v5 = vld [vmem:[#allocation8 + $0x170] sm:$0xff] }
  0x76   :  { %687 = vmatpush1.bf16.msra.mxu0 %v686_v8  ;;  %v730_v8 = vpack.c.bf16 %v315_v5, %v311_v4 }
  0x77   :  { %689 = vmatprep.subr.bf16.mxu0 %v688_v11  ;;  %v323_v11 = vld [vmem:[#allocation8 + $0x1b0] sm:$0xff] }
  0x78   :  { %v734_v12 = vpack.c.bf16 %v323_v11, %v319_v10 }
  0x7a   :  { %691 = vmatpush1.bf16.msra.mxu0 %v690_v14  ;;  %v330_v14 = vld [vmem:[#allocation8 + $0x1e8] sm:$0xff] }
  0x7b   :  { %693 = vmatprep.subr.bf16.mxu0 %v692_v17  ;;  %v704_v16 = vpack.c.bf16 %v330_v14, %v326_v13  ;;  %v332_v17 = vld [vmem:[#allocation8 + $0x1f8] sm:$0xff] }
  0x7e   :  { %695 = vmatpush1.bf16.msra.mxu0 %v694_v20  ;;  %v736_v20 = vpack.c.bf16 %v332_v17, %v328_v15 }
  0x7f   :  { %697 = vmatprep.subr.bf16.mxu0 %v696_v23  ;;  %v331_v23 = vld [vmem:[#allocation8 + $0x1f0] sm:$0xff] }
  0x80   :  { %v738_v24 = vpack.c.bf16 %v331_v23, %v327_v22 }
  0x82   :  { %699 = vmatpush1.bf16.msra.mxu0 %v698_v26 }
  0x83   :  { %701 = vmatprep.subr.bf16.mxu0 %v700_v29 }
  0x86   :  { %703 = vmatpush1.bf16.msra.mxu0 %v702_v32  ;;  %v337_v32 = vsub.s32 0, %v336_v31 }
  0x87   :  { %705 = vmatprep.subr.bf16.mxu0 %v704_v16 }
  0x88   :  { %v338_v37 = vrot.slane %v333_v34, %v337_v32 }
  0x8a   :  { %707 = vmatpush1.bf16.msra.mxu0 %v706_v21 }
 0x140   :  { %v170_v36 = vpop.f32.mrb[0].mxu0 }
 0x141   :  { %v171_v39 = vadd.f32 %v522_v33, %v170_v36  ;;  %v592_v40 = vpop.f32.mrb[1].mxu0  ;;  %v345_v33 = vsub.s32 2, %v336_v31  ;;  %v349_v36 = vsub.s32 3, %v336_v31 }
 0x143   :  { %v174_v42 = vmax.f32 %v171_v39, 0.0  ;;  %v346_v38 = vrot.slane %v333_v34, %v345_v33  ;;  %v342_v39 = vrot.slane %v333_v34, %v341_v35  ;;  %v350_v40 = vrot.slane %v333_v34, %v349_v36 }
 0x145   :  { %626 = vmatmul.mubr.f32.vlgmr.msra.gmra.mrb[0].mxu1 %v174_v42 }
 0x146   :  { %711 = vmatpush1.bf16.msra.mxu1 %v710_v41  ;;  %490 = vmatprep.mubr.f32.mxu1 %v888_v1  ;;  %v307_v1 = vld [vmem:[#allocation8 + $0x130] sm:$0xff] }
 0x147   :  { %713 = vmatprep.subr.bf16.mxu1 %v712_v43  ;;  %v726_v2 = vpack.c.bf16 %v307_v1, %v303_v62 }
 0x14a   :  { %715 = vmatpush1.bf16.msra.mxu1 %v714_v48 }
 0x14b   :  { %717 = vmatprep.subr.bf16.mxu1 %v716_v49 }
 0x14e   :  { %719 = vmatpush1.bf16.msra.mxu1 %v718_v54 }
 0x14f   :  { %721 = vmatprep.subr.bf16.mxu1 %v720_v55 }
 0x152   :  { %723 = vmatpush1.bf16.msra.mxu1 %v722_v60 }
 0x153   :  { %725 = vmatprep.subr.bf16.mxu1 %v724_v61 }
 0x156   :  { %727 = vmatpush1.bf16.msra.mxu1 %v726_v2 }
 0x157   :  { %729 = vmatprep.subr.bf16.mxu1 %v728_v3 }
 0x15a   :  { %731 = vmatpush1.bf16.msra.mxu1 %v730_v8 }
 0x15b   :  { %733 = vmatprep.subr.bf16.mxu1 %v732_v9 }
 0x15e   :  { %735 = vmatpush1.bf16.msra.mxu1 %v734_v12 }
 0x15f   :  { %737 = vmatprep.subr.bf16.mxu1 %v736_v20 }
 0x162   :  { %739 = vmatpush1.bf16.msra.mxu1 %v738_v24 }
 0x218   :  { %v264_v26 = vpop.f32.mrb[0].mxu1 }
 0x219   :  { %v265_v27 = vadd.f32 %v523_v25, %v264_v26  ;;  %v627_v28 = vpop.f32.mrb[1].mxu1 }
 0x21b   :  { %v268_v29 = vmax.f32 %v265_v27, 0.0 }
 0x21d   :  { %420 = vmatmul.mubr.f32.vlgmr.msra.gmra.mrb[2].mxu0 %v268_v29  ;;  %491 = vmatmul.mubr.f32.vlgmr.msra.gmra.mrb[2].mxu1 %v268_v29 }
 0x2f0   :  { %v421_v41 = vpop.f32.mrb[2].mxu0  ;;  %v492_v42 = vpop.f32.mrb[2].mxu1 }
 0x2f1   :  { %v422_v43 = vadd.f32 %v421_v41, %v338_v37  ;;  %v493_v44 = vadd.f32 %v492_v42, %v346_v38  ;;  %v423_v45 = vpop.f32.mrb[3].mxu0  ;;  %v494_v46 = vpop.f32.mrb[3].mxu1 }
 0x2f2   :  { %v424_v47 = vadd.f32 %v423_v45, %v342_v39  ;;  %v495_v48 = vadd.f32 %v494_v46, %v350_v40 }
 0x2f3   :  { %752 = vtanh.f32 %v422_v43 }
 0x2f4   :  { %754 = vtanh.f32 %v493_v44 }
 0x2f5   :  { %756 = vtanh.f32 %v424_v47 }
 0x2f6   :  { %758 = vtanh.f32 %v495_v48 }
 0x2fd   :  { %v753_v49 = vpop.eup %752 }
 0x2fe   :  { %v755_v50 = vpop.eup %754  ;;  %501 = vst [vmem:[#allocation10] sm:$0xff] %v753_v49 }
 0x2ff   :  { %v757_v51 = vpop.eup %756  ;;  %503 = vst [vmem:[#allocation10 + $0x10] sm:$0xff] %v755_v50 }
 0x300   :  { %v759_v52 = vpop.eup %758  ;;  %502 = vst [vmem:[#allocation10 + $0x8] sm:$0xff] %v757_v51 }
 0x301   :  { %504 = vst [vmem:[#allocation10 + $0x18] sm:$0xff] %v759_v52 }
 0x302   :  { %859 = shalt.err (!%p856_p8)
}
 0x303   :  { %s860_s10 = scalar_lea.hbm %s1032_s7, 512 }
 0x304   :  { %p861_p9 = scmp.ne.s32.totalorder %s1032_s7, %s860_s10  ;;  %p864_p10 = scmp.lt.u32.totalorder %s860_s10, %s1032_s7 }
 0x306   :  { %p866_p11 = pnand %p864_p10, %p861_p9 }
 0x308   :  { %869 = shalt.err (!%p866_p11)
}
 0x309   :  { %514 = dma.vmem_to_hbm [thread:$0]  %s512_s6, 512, %s1032_s7, [#allocation4]  }
 0x30a   :  { %876 = dma.done.wait [#allocation4], 512  }
 0x30b   :  { %877 = vsyncadd [#allocation4], 4294966784 }
 0x30c   :  { %518 = vsyncpa [#allocation3], 1 }
 0x30d   :  { %519 = vsyncpa [#allocation6], 1 }
 0x30e   :  { %520 = vsyncpa [#allocation9], 1 }
 0x30f   :  { %521 = vsyncpa [#allocation4], 1 }

</bundles_post_ra>
